<compile_context>
chip_gen: v7x
topology: tpu7x:2x2x1
jax: 0.10.0
libtpu: 0.0.40
codegen_flags: <defaults>
</compile_context>

<pallas_src>
import functools

import jax
import jax.numpy as jnp
from jax.experimental import pallas as pl
from jax.experimental.pallas import tpu as pltpu

EPS = 1e-8
_SUBLANE = 8
_LANE = 128
# ~1 MiB (f32) per plane block => bmp/nmp per-step VMEM footprint
# (2 in-planes + 2 out-planes) * 2 buffers * 1 MiB ~= 8 MiB.
_MAX_BLOCK_ELEMS = 256 * 1024


# ----------------------------------------------------------------------------
# Layout / tiling helpers
# ----------------------------------------------------------------------------
def _choose_layout(n, c, h, w):
    """Pick a lane-dense 2D (ROWS, COLS) view of one contiguous (N,C,H,W) plane."""
    rows, cols = n * c, h * w
    if cols % _LANE == 0:
        return rows, cols
    total = rows * cols
    for lane in (1024, 512, 256, 128):
        if total % lane == 0:
            return total // lane, lane
    # TODO(synk): spatial sizes that do not factor into 128*k fall back to a
    #             non-lane-dense layout (still correct, masked stores).
    return rows, cols


def _pick_tile_rows(rows, cols):
    """Largest row tile (multiple of 8) whose (tile, cols) f32 block fits the
    per-plane budget; full extent when the whole array is small."""
    t = (_MAX_BLOCK_ELEMS // max(cols, 1)) // _SUBLANE * _SUBLANE
    t = max(t, _SUBLANE)
    return rows if t >= rows else t


# ----------------------------------------------------------------------------
# Kernels
# ----------------------------------------------------------------------------
def _mag_kernel(x_ref, o_ref):
    re = x_ref[0]
    im = x_ref[1]
    o_ref[...] = jnp.sqrt(jnp.maximum(re * re + im * im, EPS)).astype(o_ref.dtype)


def _bmp_kernel(x_ref, o_ref):
    re = x_ref[0]
    im = x_ref[1]
    o_ref[0] = jnp.sqrt(jnp.maximum(re * re + im * im, EPS)).astype(o_ref.dtype)
    o_ref[1] = jnp.arctan2(im, re).astype(o_ref.dtype)


def _make_nmp_pass1_kernel(rows, tile_r):
    """mag/phase tiles + global min/max accumulated into a resident VMEM block."""

    def kernel(x_ref, mp_ref, stats_ref):
        i = pl.program_id(0)
        re = x_ref[0]
        im = x_ref[1]
        mag = jnp.sqrt(jnp.maximum(re * re + im * im, EPS))
        ph = jnp.arctan2(im, re)
        mp_ref[0] = mag.astype(mp_ref.dtype)
        mp_ref[1] = ph.astype(mp_ref.dtype)

        # Mask rows beyond the real extent (ragged last tile) before reducing.
        row_ids = jax.lax.broadcasted_iota(jnp.int32, (tile_r, 1), 0) + i * tile_r
        valid = row_ids < rows
        pinf = jnp.float32(jnp.inf)
        ninf = jnp.float32(-jnp.inf)
        mag32 = mag.astype(jnp.float32)
        ph32 = ph.astype(jnp.float32)
        mag_min = jnp.min(jnp.where(valid, mag32, pinf))
        mag_max = jnp.max(jnp.where(valid, mag32, ninf))
        ph_min = jnp.min(jnp.where(valid, ph32, pinf))
        ph_max = jnp.max(jnp.where(valid, ph32, ninf))

        @pl.when(i == 0)
        def _():
            stats_ref[0] = jnp.full((_SUBLANE, _LANE), pinf, jnp.float32)
            stats_ref[1] = jnp.full((_SUBLANE, _LANE), ninf, jnp.float32)
            stats_ref[2] = jnp.full((_SUBLANE, _LANE), pinf, jnp.float32)
            stats_ref[3] = jnp.full((_SUBLANE, _LANE), ninf, jnp.float32)

        stats_ref[0] = jnp.minimum(stats_ref[0], mag_min)
        stats_ref[1] = jnp.maximum(stats_ref[1], mag_max)
        stats_ref[2] = jnp.minimum(stats_ref[2], ph_min)
        stats_ref[3] = jnp.maximum(stats_ref[3], ph_max)

    return kernel


def _nmp_pass2_kernel(stats_ref, mp_ref, o_ref):
    # Every lane of each stats plane holds the same value; reduce to a scalar.
    mag_min = jnp.min(stats_ref[0])
    mag_max = jnp.max(stats_ref[1])
    ph_min = jnp.min(stats_ref[2])
    ph_max = jnp.max(stats_ref[3])
    inv_mag = 1.0 / (mag_max - mag_min + EPS)   # one scalar recip per tile
    inv_ph = 1.0 / (ph_max - ph_min + EPS)
    o_ref[0] = ((mp_ref[0] - mag_min) * inv_mag).astype(o_ref.dtype)
    o_ref[1] = ((mp_ref[1] - ph_min) * inv_ph).astype(o_ref.dtype)


# ----------------------------------------------------------------------------
# Wrapper
# ----------------------------------------------------------------------------
@functools.partial(jax.jit, static_argnums=1)
def project(x, projection):
    """Pallas equivalent of Project(projection)(x); x: (2, N, C, H, W)."""
    two, n, c, h, w = x.shape
    assert two == 2, "leading axis must be (real, imag)"

    if projection == 'cat':
        # Pure data movement: keep in XLA so it fuses with producers/consumers.
        return jnp.concatenate([x[0], x[1]], axis=1)

    rows, cols = _choose_layout(n, c, h, w)
    tile_r = _pick_tile_rows(rows, cols)
    grid = (pl.cdiv(rows, tile_r),)
    x2 = x.reshape(2, rows, cols)   # metadata-only view of contiguous x

    in_spec = pl.BlockSpec((2, tile_r, cols), lambda i: (0, i, 0))
    plane_out_spec = pl.BlockSpec((tile_r, cols), lambda i: (i, 0))
    pair_spec = pl.BlockSpec((2, tile_r, cols), lambda i: (0, i, 0))

    if projection == 'mag':
        out = pl.pallas_call(
            _mag_kernel,
            out_shape=jax.ShapeDtypeStruct((rows, cols), x.dtype),
            grid=grid,
            in_specs=[in_spec],
            out_specs=plane_out_spec,
            compiler_params=pltpu.CompilerParams(
                dimension_semantics=("parallel",)),
        )(x2)
        return out.reshape(n, c, h, w)

    if projection == 'bmp':
        out = pl.pallas_call(
            _bmp_kernel,
            out_shape=jax.ShapeDtypeStruct((2, rows, cols), x.dtype),
            grid=grid,
            in_specs=[in_spec],
            out_specs=pair_spec,
            compiler_params=pltpu.CompilerParams(
                dimension_semantics=("parallel",)),
        )(x2)
        return out.reshape(2, n, c, h, w)

    if projection == 'nmp':
        stats_spec = pl.BlockSpec((4, _SUBLANE, _LANE), lambda i: (0, 0, 0))
        mp, stats = pl.pallas_call(
            _make_nmp_pass1_kernel(rows, tile_r),
            out_shape=(
                jax.ShapeDtypeStruct((2, rows, cols), x.dtype),
                jax.ShapeDtypeStruct((4, _SUBLANE, _LANE), jnp.float32),
            ),
            grid=grid,
            in_specs=[in_spec],
            out_specs=(pair_spec, stats_spec),
            compiler_params=pltpu.CompilerParams(
                dimension_semantics=("arbitrary",)),  # stats accumulate sequentially
        )(x2)
        out = pl.pallas_call(
            _nmp_pass2_kernel,
            out_shape=jax.ShapeDtypeStruct((2, rows, cols), x.dtype),
            grid=grid,
            in_specs=[stats_spec, pair_spec],
            out_specs=pair_spec,
            compiler_params=pltpu.CompilerParams(
                dimension_semantics=("parallel",)),
        )(stats, mp)
        return out.reshape(2, n, c, h, w)

    raise ValueError(f"unknown projection: {projection}")


# ----------------------------------------------------------------------------
# Reference (plain jnp) for sanity check
# ----------------------------------------------------------------------------
def _project_ref(x, projection):
    re, im = x[0], x[1]
    mag = jnp.sqrt(jnp.maximum(re * re + im * im, EPS))
    ph = jnp.arctan2(im, re)
    if projection == 'mag':
        return mag
    if projection == 'cat':
        return jnp.concatenate([re, im], axis=1)
    if projection == 'bmp':
        return jnp.stack([mag, ph], axis=0)
    if projection == 'nmp':
        def _minmax(t):
            return (t - jnp.min(t)) / (jnp.max(t) - jnp.min(t) + EPS)
        return jnp.stack([_minmax(mag), _minmax(ph)], axis=0)
    raise ValueError(projection)


if __name__ == "__main__":
    key = jax.random.PRNGKey(0)
    # (2, N, C, H, W) = (real/imag, batch=2, channels=4, 16x16 spatial)
    x = jax.random.normal(key, (2, 2, 4, 16, 16), dtype=jnp.float32)

    expected_shapes = {
        'mag': (2, 4, 16, 16),
        'cat': (2, 8, 16, 16),
        'bmp': (2, 2, 4, 16, 16),
        'nmp': (2, 2, 4, 16, 16),
    }

    ok = True
    for proj in ('mag', 'cat', 'bmp', 'nmp'):
        out = jax.block_until_ready(project(x, proj))
        ref = _project_ref(x, proj)
        if out.shape != expected_shapes[proj]:
            ok = False
            print(f"shape mismatch for {proj}: {out.shape} vs {expected_shapes[proj]}")
        if not jnp.allclose(out, ref, atol=1e-5, rtol=1e-5):
            ok = False
            print(f"value mismatch for {proj}: max abs err "
                  f"{jnp.max(jnp.abs(out - ref)):.3e}")

    if ok:
        print("KERNEL_OK")
</pallas_src>

<mosaic_0001>
module attributes {stable_mosaic.version = 11 : i64} {
  func.func @_mag_kernel(%arg0: i32, %arg1: memref<2x8x256xf32, #tpu.memory_space<vmem>>, %arg2: memref<8x256xf32, #tpu.memory_space<vmem>>) attributes {dimension_semantics = [#tpu.dimension_semantics<parallel>], iteration_bounds = array<i64: 1>, scalar_prefetch = 0 : i64, scratch_operands = 0 : i64, tpu.core_type = #tpu.core_type<tc>, window_params = [{transform_indices = @transform_0, window_bounds = array<i64: 2, 8, 256>}, {transform_indices = @transform_1, window_bounds = array<i64: 8, 256>}]} {
    %c0 = arith.constant 0 : index
    %c0_0 = arith.constant 0 : index
    %c0_1 = arith.constant 0 : index
    %0 = vector.load %arg1[%c0, %c0_0, %c0_1] : memref<2x8x256xf32, #tpu.memory_space<vmem>>, vector<1x8x256xf32>
    %1 = vector.shape_cast %0 : vector<1x8x256xf32> to vector<8x256xf32>
    %c1 = arith.constant 1 : index
    %c0_2 = arith.constant 0 : index
    %c0_3 = arith.constant 0 : index
    %2 = vector.load %arg1[%c1, %c0_2, %c0_3] : memref<2x8x256xf32, #tpu.memory_space<vmem>>, vector<1x8x256xf32>
    %3 = vector.shape_cast %2 : vector<1x8x256xf32> to vector<8x256xf32>
    %4 = arith.mulf %1, %1 : vector<8x256xf32>
    %5 = arith.mulf %3, %3 : vector<8x256xf32>
    %6 = arith.addf %4, %5 : vector<8x256xf32>
    %cst = arith.constant 9.99999993E-9 : f32
    %7 = vector.broadcast %cst : f32 to vector<8x256xf32>
    %8 = arith.maximumf %6, %7 : vector<8x256xf32>
    %9 = math.sqrt %8 : vector<8x256xf32>
    %c0_4 = arith.constant 0 : index
    %c0_5 = arith.constant 0 : index
    %10 = vector.load %arg2[%c0_4, %c0_5] : memref<8x256xf32, #tpu.memory_space<vmem>>, vector<8x256xf32>
    tpu.vector_store %arg2[%c0_4, %c0_5], %9 {strides = array<i32>} : memref<8x256xf32, #tpu.memory_space<vmem>>, vector<8x256xf32>,
    return
  }
  func.func @transform_0(%arg0: i32) -> (i32, i32, i32) {
    %c0_i32 = arith.constant 0 : i32
    %c0_i32_0 = arith.constant 0 : i32
    %c0_i32_1 = arith.constant 0 : i32
    return %c0_i32, %arg0, %c0_i32_0 : i32, i32, i32
  }
  func.func @transform_1(%arg0: i32) -> (i32, i32) {
    %c0_i32 = arith.constant 0 : i32
    %c0_i32_0 = arith.constant 0 : i32
    return %arg0, %c0_i32 : i32, i32
  }
}

</mosaic_0001>

<bundles_post_ra>
// kernel: project.1
= control target key start
LH: loop header
LB: loop body
LE: loop exit
PB: predicated region body
PF: predicated region fallthrough
CT: control target
= control target key end

     0   :  { %s75_s0 = inlined_call_operand.vmem [shape: f32[2,8,256], index: 0, kind: input, shape index: {}]   ;;  %s76_s1 = inlined_call_operand.vmem [shape: f32[8,256], index: 1, kind: output, shape index: {}]  }
   0x1   :  { %v8_v0 = vld [vmem:[%s75_s0] sm:$0xff]  ;;  %v41_v1 = vld [vmem:[%s75_s0 + $0x10] sm:$0xff]  ;;  %v9_v2 = vld [vmem:[%s75_s0 + $0x8] sm:$0xff] }
   0x2   :  { %v13_v3 = vmul.f32 %v8_v0, %v8_v0  ;;  %v15_v4 = vmul.f32 %v41_v1, %v41_v1  ;;  %v42_v5 = vld [vmem:[%s75_s0 + $0x18] sm:$0xff]  ;;  %v14_v6 = vmul.f32 %v9_v2, %v9_v2 }
   0x3   :  { %v16_v7 = vmul.f32 %v42_v5, %v42_v5 }
   0x4   :  { %v17_v8 = vadd.f32 %v15_v4, %v13_v3 }
   0x5   :  { %v18_v9 = vadd.f32 %v16_v7, %v14_v6 }
   0x6   :  { %v19_v10 = vmax.f32 %v17_v8, 1e-08 }
   0x7   :  { %v20_v11 = vmax.f32 %v18_v9, 1e-08 }
   0x8   :  { %43 = vrsqrt.f32 %v19_v10  ;;  %vm23_vm0 = vcmp.eq.f32.partialorder %v19_v10, inf  ;;  %v26_v13 = vand.u32 2147483648, %v19_v10  ;;  %vm25_vm1 = vcmp.eq.f32.partialorder %v19_v10, 0.0 }
   0x9   :  { %45 = vrsqrt.f32 %v20_v11  ;;  %vm30_vm2 = vcmp.eq.f32.partialorder %v20_v11, inf  ;;  %v33_v16 = vand.u32 2147483648, %v20_v11  ;;  %vm32_vm3 = vcmp.eq.f32.partialorder %v20_v11, 0.0 }
  0x12   :  { %v44_v12 = vpop.eup %43 }
  0x13   :  { %v46_v14 = vpop.eup %45  ;;  %v22_v15 = vmul.f32 %v44_v12, %v19_v10 }
  0x14   :  { %v29_v17 = vmul.f32 %v46_v14, %v20_v11 }
  0x15   :  { %v24_v18 = vsel %vm23_vm0, %v19_v10, %v22_v15 }
  0x16   :  { %v27_v19 = vsel %vm25_vm1, %v26_v13, %v24_v18  ;;  %v31_v20 = vsel %vm30_vm2, %v20_v11, %v29_v17 }
  0x17   :  { %35 = vst [vmem:[%s76_s1] sm:$0xff] %v27_v19  ;;  %v34_v21 = vsel %vm32_vm3, %v33_v16, %v31_v20 }
  0x18   :  { %36 = vst [vmem:[%s76_s1 + $0x8] sm:$0xff] %v34_v21 }

</bundles_post_ra>
